<compile_context>
chip_gen: v7x
topology: tpu7x:2x2x1
jax: 0.10.0
libtpu: 0.0.40
codegen_flags: <defaults>
</compile_context>

<pallas_src>
import jax
import jax.numpy as jnp
from jax import lax
from jax.experimental import pallas as pl
from jax.experimental.pallas import tpu as pltpu


def _mlp_kernel(x_ref, w1_ref, b1_ref, w2_ref, b2_ref, w3_ref, b3_ref, o_ref):
    # Hot path: two MXU matmuls + VPU bias/ReLU + VPU*XLU final projection.
    x = x_ref[...].astype(jnp.float32)                       # (tb, 13)

    h1 = jnp.dot(x, w1_ref[...], preferred_element_type=jnp.float32,
                 precision=lax.Precision.HIGHEST) + b1_ref[...]
    h1 = jnp.maximum(h1, 0.0)                                # (tb, 32)

    h2 = jnp.dot(h1, w2_ref[...], preferred_element_type=jnp.float32,
                 precision=lax.Precision.HIGHEST) + b2_ref[...]
    h2 = jnp.maximum(h2, 0.0)                                # (tb, 32)

    # Final 32 -> 1 projection: elementwise multiply (VPU) + lane reduce (XLU)
    # keeps the MXU free.  w3_ref is the row vector (1, 32).
    y = jnp.sum(h2 * w3_ref[...], axis=-1, keepdims=True) + b3_ref[...]   # (tb, 1)
    o_ref[...] = y.astype(o_ref.dtype)


def regression_model_forward(x, params, *, batch_tile=2048):
    """x: [B, 13] (f32 or bf16) -> [B, 1] float32."""
    w1, b1, w2, b2, w3, b3 = params
    B, f_in = x.shape
    h = w1.shape[1]           # 32
    f_out = w3.shape[1]       # 1
    assert f_out == 1, "final VPU-reduce projection assumes a single output"

    # Batch tile: multiple of 8 (sublane quantum), clamped to the batch so a
    # small batch uses a single block.  No explicit padding: Pallas handles
    # the partial last block (OOB output rows are discarded on writeback).
    rb = ((B + 7) // 8) * 8
    tb = max(8, min(((batch_tile + 7) // 8) * 8, rb))
    num_tiles = pl.cdiv(B, tb)

    # Whole-array block with a constant block index => resident in VMEM.
    full2d = lambda shp: pl.BlockSpec(shp, lambda i: (0, 0))

    out = pl.pallas_call(
        _mlp_kernel,
        out_shape=jax.ShapeDtypeStruct((B, 1), jnp.float32),
        grid_spec=pltpu.PrefetchScalarGridSpec(
            num_scalar_prefetch=0,
            grid=(num_tiles,),
            in_specs=[
                pl.BlockSpec((tb, f_in), lambda i: (i, 0)),   # streamed x tile
                full2d((f_in, h)),                            # w1
                full2d((1, h)),                               # b1
                full2d((h, h)),                               # w2
                full2d((1, h)),                               # b2
                full2d((1, h)),                               # w3 (row vector)
                full2d((1, f_out)),                           # b3
            ],
            out_specs=pl.BlockSpec((tb, 1), lambda i: (i, 0)),
        ),
        compiler_params=pltpu.CompilerParams(
            # Batch tiles are independent -> shard across TensorCores on v7x.
            dimension_semantics=("parallel",),
        ),
    )(x, w1, b1, w2, b2, w3.reshape(1, h), b3.reshape(1, f_out))
    return out


def init_params(key):
    """Deterministic parameter init matching nn.Linear shapes.

    PyTorch nn.Linear(in, out) has weight [out, in], bias [out]. We store the
    weight transposed ([in, out]) and the bias as [1, out] for the kernel.
    """
    k1, k2, k3, k4, k5, k6 = jax.random.split(key, 6)

    def lin_init(kw, kb, fan_in, fan_out):
        bound = 1.0 / jnp.sqrt(fan_in)
        w = jax.random.uniform(kw, (fan_in, fan_out), jnp.float32, -bound, bound)
        b = jax.random.uniform(kb, (1, fan_out), jnp.float32, -bound, bound)
        return w, b

    w1, b1 = lin_init(k1, k2, 13, 32)
    w2, b2 = lin_init(k3, k4, 32, 32)
    w3, b3 = lin_init(k5, k6, 32, 1)
    return (w1, b1, w2, b2, w3, b3)


def reference_forward(x, params):
    w1, b1, w2, b2, w3, b3 = params
    hp = lax.Precision.HIGHEST
    x = x.astype(jnp.float32)
    h1 = jnp.maximum(jnp.dot(x, w1, precision=hp) + b1, 0.0)
    h2 = jnp.maximum(jnp.dot(h1, w2, precision=hp) + b2, 0.0)
    return jnp.dot(h2, w3, precision=hp) + b3


if __name__ == "__main__":
    key = jax.random.PRNGKey(0)
    k_params, k_x = jax.random.split(key)
    params = init_params(k_params)

    fwd = jax.jit(regression_model_forward, static_argnames=("batch_tile",))

    # Small single-tile batch, plus a batch that (with a small tile override)
    # exercises a multi-step "parallel" grid and a ragged last block.
    for bsz, tile in ((16, 2048), (300, 128)):
        x = jax.random.normal(jax.random.fold_in(k_x, bsz), (bsz, 13),
                              dtype=jnp.float32)
        out = jax.block_until_ready(fwd(x, params, batch_tile=tile))
        ref = reference_forward(x, params)

        assert out.shape == (bsz, 1), out.shape
        assert jnp.allclose(out, ref, atol=1e-4, rtol=1e-4), \
            f"mismatch vs reference for B={bsz}"

    print("KERNEL_OK")
</pallas_src>

<mosaic_0001>
module attributes {stable_mosaic.version = 11 : i64} {
  func.func @_mlp_kernel(%arg0: i32, %arg1: memref<16x13xf32, #tpu.memory_space<vmem>>, %arg2: memref<13x32xf32, #tpu.memory_space<vmem>>, %arg3: memref<1x32xf32, #tpu.memory_space<vmem>>, %arg4: memref<32x32xf32, #tpu.memory_space<vmem>>, %arg5: memref<1x32xf32, #tpu.memory_space<vmem>>, %arg6: memref<1x32xf32, #tpu.memory_space<vmem>>, %arg7: memref<1x1xf32, #tpu.memory_space<vmem>>, %arg8: memref<16x1xf32, #tpu.memory_space<vmem>>) attributes {dimension_semantics = [#tpu.dimension_semantics<parallel>], iteration_bounds = array<i64: 1>, scalar_prefetch = 0 : i64, scratch_operands = 0 : i64, tpu.core_type = #tpu.core_type<tc>, window_params = [{transform_indices = @transform_0, window_bounds = array<i64: 16, 13>}, {pipeline_mode = #tpu.pipeline_mode<synchronous>, transform_indices = @transform_1, window_bounds = array<i64: 13, 32>}, {pipeline_mode = #tpu.pipeline_mode<synchronous>, transform_indices = @transform_2, window_bounds = array<i64: 1, 32>}, {pipeline_mode = #tpu.pipeline_mode<synchronous>, transform_indices = @transform_3, window_bounds = array<i64: 32, 32>}, {pipeline_mode = #tpu.pipeline_mode<synchronous>, transform_indices = @transform_4, window_bounds = array<i64: 1, 32>}, {pipeline_mode = #tpu.pipeline_mode<synchronous>, transform_indices = @transform_5, window_bounds = array<i64: 1, 32>}, {pipeline_mode = #tpu.pipeline_mode<synchronous>, transform_indices = @transform_6, window_bounds = array<i64: 1, 1>}, {transform_indices = @transform_7, window_bounds = array<i64: 16, 1>}]} {
    %c0 = arith.constant 0 : index
    %c0_0 = arith.constant 0 : index
    %0 = vector.load %arg1[%c0, %c0_0] : memref<16x13xf32, #tpu.memory_space<vmem>>, vector<16x13xf32>
    %c0_1 = arith.constant 0 : index
    %c0_2 = arith.constant 0 : index
    %1 = vector.load %arg2[%c0_1, %c0_2] : memref<13x32xf32, #tpu.memory_space<vmem>>, vector<13x32xf32>
    %cst = arith.constant dense<0.000000e+00> : vector<16x32xf32>
    %2 = tpu.matmul %0, %1, %cst {dimension_numbers = #tpu.dot_dimension_numbers<[1], [0], [0], [1], [0, 0, 1, 1], [], []>, precision = #tpu.contract_precision<fp32>} : vector<16x13xf32>, vector<13x32xf32>, vector<16x32xf32> -> vector<16x32xf32>
    %c0_3 = arith.constant 0 : index
    %c0_4 = arith.constant 0 : index
    %3 = vector.load %arg3[%c0_3, %c0_4] : memref<1x32xf32, #tpu.memory_space<vmem>>, vector<1x32xf32>
    %4 = vector.broadcast %3 : vector<1x32xf32> to vector<16x32xf32>
    %5 = arith.addf %2, %4 : vector<16x32xf32>
    %cst_5 = arith.constant 0.000000e+00 : f32
    %6 = vector.broadcast %cst_5 : f32 to vector<16x32xf32>
    %7 = arith.maximumf %5, %6 : vector<16x32xf32>
    %c0_6 = arith.constant 0 : index
    %c0_7 = arith.constant 0 : index
    %8 = vector.load %arg4[%c0_6, %c0_7] : memref<32x32xf32, #tpu.memory_space<vmem>>, vector<32x32xf32>
    %cst_8 = arith.constant dense<0.000000e+00> : vector<16x32xf32>
    %9 = tpu.matmul %7, %8, %cst_8 {dimension_numbers = #tpu.dot_dimension_numbers<[1], [0], [0], [1], [0, 0, 1, 1], [], []>, precision = #tpu.contract_precision<fp32>} : vector<16x32xf32>, vector<32x32xf32>, vector<16x32xf32> -> vector<16x32xf32>
    %c0_9 = arith.constant 0 : index
    %c0_10 = arith.constant 0 : index
    %10 = vector.load %arg5[%c0_9, %c0_10] : memref<1x32xf32, #tpu.memory_space<vmem>>, vector<1x32xf32>
    %11 = vector.broadcast %10 : vector<1x32xf32> to vector<16x32xf32>
    %12 = arith.addf %9, %11 : vector<16x32xf32>
    %cst_11 = arith.constant 0.000000e+00 : f32
    %13 = vector.broadcast %cst_11 : f32 to vector<16x32xf32>
    %14 = arith.maximumf %12, %13 : vector<16x32xf32>
    %c0_12 = arith.constant 0 : index
    %c0_13 = arith.constant 0 : index
    %15 = vector.load %arg6[%c0_12, %c0_13] : memref<1x32xf32, #tpu.memory_space<vmem>>, vector<1x32xf32>
    %16 = vector.broadcast %15 : vector<1x32xf32> to vector<16x32xf32>
    %17 = arith.mulf %14, %16 : vector<16x32xf32>
    %cst_14 = arith.constant dense<0.000000e+00> : vector<16xf32>
    %18 = vector.multi_reduction <add>, %17, %cst_14 [1] : vector<16x32xf32> to vector<16xf32>
    %19 = vector.shape_cast %18 : vector<16xf32> to vector<16x1xf32>
    %c0_15 = arith.constant 0 : index
    %c0_16 = arith.constant 0 : index
    %20 = vector.load %arg7[%c0_15, %c0_16] : memref<1x1xf32, #tpu.memory_space<vmem>>, vector<1x1xf32>
    %21 = vector.broadcast %20 : vector<1x1xf32> to vector<16x1xf32>
    %22 = arith.addf %19, %21 : vector<16x1xf32>
    %c0_17 = arith.constant 0 : index
    %c0_18 = arith.constant 0 : index
    %23 = vector.load %arg8[%c0_17, %c0_18] : memref<16x1xf32, #tpu.memory_space<vmem>>, vector<16x1xf32>
    tpu.vector_store %arg8[%c0_17, %c0_18], %22 {strides = array<i32>} : memref<16x1xf32, #tpu.memory_space<vmem>>, vector<16x1xf32>,
    return
  }
  func.func @transform_0(%arg0: i32) -> (i32, i32) {
    %c0_i32 = arith.constant 0 : i32
    %c0_i32_0 = arith.constant 0 : i32
    return %arg0, %c0_i32 : i32, i32
  }
  func.func @transform_1(%arg0: i32) -> (i32, i32) {
    %c0_i32 = arith.constant 0 : i32
    %c0_i32_0 = arith.constant 0 : i32
    %c0_i32_1 = arith.constant 0 : i32
    return %c0_i32, %c0_i32_0 : i32, i32
  }
  func.func @transform_2(%arg0: i32) -> (i32, i32) {
    %c0_i32 = arith.constant 0 : i32
    %c0_i32_0 = arith.constant 0 : i32
    %c0_i32_1 = arith.constant 0 : i32
    return %c0_i32, %c0_i32_0 : i32, i32
  }
  func.func @transform_3(%arg0: i32) -> (i32, i32) {
    %c0_i32 = arith.constant 0 : i32
    %c0_i32_0 = arith.constant 0 : i32
    %c0_i32_1 = arith.constant 0 : i32
    return %c0_i32, %c0_i32_0 : i32, i32
  }
  func.func @transform_4(%arg0: i32) -> (i32, i32) {
    %c0_i32 = arith.constant 0 : i32
    %c0_i32_0 = arith.constant 0 : i32
    %c0_i32_1 = arith.constant 0 : i32
    return %c0_i32, %c0_i32_0 : i32, i32
  }
  func.func @transform_5(%arg0: i32) -> (i32, i32) {
    %c0_i32 = arith.constant 0 : i32
    %c0_i32_0 = arith.constant 0 : i32
    %c0_i32_1 = arith.constant 0 : i32
    return %c0_i32, %c0_i32_0 : i32, i32
  }
  func.func @transform_6(%arg0: i32) -> (i32, i32) {
    %c0_i32 = arith.constant 0 : i32
    %c0_i32_0 = arith.constant 0 : i32
    %c0_i32_1 = arith.constant 0 : i32
    return %c0_i32, %c0_i32_0 : i32, i32
  }
  func.func @transform_7(%arg0: i32) -> (i32, i32) {
    %c0_i32 = arith.constant 0 : i32
    %c0_i32_0 = arith.constant 0 : i32
    return %arg0, %c0_i32 : i32, i32
  }
}

</mosaic_0001>

<bundles_post_ra>
// kernel: regression_model_forward.1
= control target key start
LH: loop header
LB: loop body
LE: loop exit
PB: predicated region body
PF: predicated region fallthrough
CT: control target
= control target key end

     0   :  { %s1638_s0 = inlined_call_operand.hbm [shape: f32[16,13], index: 0, kind: input, shape index: {}]   ;;  %s1639_s1 = inlined_call_operand.hbm [shape: f32[13,32], index: 1, kind: input, shape index: {}]   ;;  %s1640_s2 = inlined_call_operand.vmem [shape: f32[1,32], index: 2, kind: input, shape index: {}]   ;;  %s1641_s3 = inlined_call_operand.hbm [shape: f32[32,32], index: 3, kind: input, shape index: {}]   ;;  %s1642_s4 = inlined_call_operand.vmem [shape: f32[1,32], index: 4, kind: input, shape index: {}]   ;;  %s1643_s5 = inlined_call_operand.vmem [shape: f32[1,32], index: 5, kind: input, shape index: {}]   ;;  %s1644_s6 = inlined_call_operand.<no memory space> [shape: f32[1,1], index: 6, kind: input, shape index: {}]   ;;  %s1645_s7 = inlined_call_operand.vmem [shape: f32[16,1], index: 7, kind: output, shape index: {}]  }
   0x1   :  { %v12_v0 = vstv %s1644_s6 }
   0x2   :  { %13 = vst [vmem:[#allocation2] sm:$0x1] %v12_v0 }
   0x3   :  { %14 = vsyncpa [#allocation4], 0 }
   0x4   :  { %15 = vsyncpa [#allocation6], 0  ;;  %s1519_s26 = smov [#allocation5]   ;;  %s1520_s28 = smov [#allocation3]  }
   0x5   :  { %s33_s27 = sshll.u32 %s1519_s26, 4  ;;  %s21_s29 = sshll.u32 %s1520_s28, 4  ;;  %s34_s27 = int_to_ptr.vmem [resolvable:$true] %s33_s27  ;;  %s1567_s29 = int_to_ptr.vmem [resolvable:$true] %s21_s29 }
   0x6   :  { %s1449_s9 = scalar_lea.hbm %s1639_s1, 256 }
   0x7   :  { %p1450_p0 = scmp.ne.s32.totalorder %s1639_s1, %s1449_s9  ;;  %p1453_p1 = scmp.lt.u32.totalorder %s1449_s9, %s1639_s1 }
   0x9   :  { %p1455_p2 = pnand %p1453_p1, %p1450_p0 }
   0xb   :  { %1458 = shalt.err (!%p1455_p2)
}
   0xc   :  { %s1459_s13 = scalar_lea.vmem %s34_s27, 256  ;;  %p1464_p4 = scmp.lt.s32.totalorder %s34_s27, %s34_s27 }
   0xd   :  { %p1460_p3 = scmp.ne.s32.totalorder %s34_s27, %s1459_s13  ;;  %p1465_p5 = scmp.lt.s32.totalorder %s1459_s13, %s1459_s13 }
   0xf   :  { %p1466_p6 = por %p1465_p5, %p1464_p4 }
  0x11   :  { %p1467_p7 = pnand %p1466_p6, %p1460_p3 }
  0x13   :  { %1470 = shalt.err (!%p1467_p7)
}
  0x14   :  { %s1521_s14 = smov 128   ;;  %s1522_s15 = smov 8  }
  0x15   :  { %39 = dma.hbm_to_vmem [thread:$0]  %s1639_s1, 256, %s34_s27, [#allocation6], %s1521_s14, %s1521_s14, %s1522_s15  }
  0x16   :  { %s1471_s20 = scalar_lea.hbm %s1638_s0, 256 }
  0x17   :  { %p1472_p8 = scmp.ne.s32.totalorder %s1638_s0, %s1471_s20  ;;  %p1475_p9 = scmp.lt.u32.totalorder %s1471_s20, %s1638_s0 }
  0x19   :  { %p1477_p10 = pnand %p1475_p9, %p1472_p8 }
  0x1b   :  { %1480 = shalt.err (!%p1477_p10)
}
  0x1c   :  { %s1481_s25 = scalar_lea.vmem %s1567_s29, 256  ;;  %p1486_p12 = scmp.lt.s32.totalorder %s1567_s29, %s1567_s29 }
  0x1d   :  { %p1482_p11 = scmp.ne.s32.totalorder %s1567_s29, %s1481_s25  ;;  %p1487_p13 = scmp.lt.s32.totalorder %s1481_s25, %s1481_s25 }
  0x1f   :  { %p1488_p0 = por %p1487_p13, %p1486_p12 }
  0x21   :  { %p1489_p1 = pnand %p1488_p0, %p1482_p11 }
  0x23   :  { %1492 = shalt.err (!%p1489_p1)
}
  0x24   :  { %27 = dma.hbm_to_vmem [thread:$0]  %s1638_s0, 256, %s1567_s29, [#allocation4], %s1521_s14, %s1521_s14, %s1522_s15  }
  0x25   :  { %s1523_s27 = smov [#allocation7]   ;;  %s1493_s9 = scalar_lea.hbm %s1641_s3, 512 }
  0x26   :  { %s47_s28 = sshll.u32 %s1523_s27, 4  ;;  %p1494_p2 = scmp.ne.s32.totalorder %s1641_s3, %s1493_s9  ;;  %s48_s28 = int_to_ptr.vmem [resolvable:$true] %s47_s28 }
  0x27   :  { %p1497_p3 = scmp.lt.u32.totalorder %s1493_s9, %s1641_s3 }
  0x29   :  { %p1499_p4 = pnand %p1497_p3, %p1494_p2 }
  0x2b   :  { %1502 = shalt.err (!%p1499_p4)
}
  0x2c   :  { %s1503_s13 = scalar_lea.vmem %s48_s28, 512  ;;  %p1508_p6 = scmp.lt.s32.totalorder %s48_s28, %s48_s28 }
  0x2d   :  { %p1504_p5 = scmp.ne.s32.totalorder %s48_s28, %s1503_s13  ;;  %p1509_p7 = scmp.lt.s32.totalorder %s1503_s13, %s1503_s13 }
  0x2f   :  { %p1510_p8 = por %p1509_p7, %p1508_p6 }
  0x31   :  { %p1511_p9 = pnand %p1510_p8, %p1504_p5 }
  0x33   :  { %1514 = shalt.err (!%p1511_p9)
}
  0x34   :  { %53 = dma.hbm_to_vmem [thread:$0]  %s1641_s3, 512, %s48_s28, [#allocation6], %s1521_s14, %s1521_s14, %s1522_s15  }
  0x35   :  { %1515 = dma.done.wait [#allocation4], 256  }
  0x36   :  { %1516 = vsyncadd [#allocation4], 4294967040 }
  0x37   :  { %1517 = dma.done.wait [#allocation6], 768  }
  0x38   :  { %1518 = vsyncadd [#allocation6], 4294966528  ;;  %vm87_vm0 = vcmask 1044480   ;;  %vm80_vm1 = vcmask 105472   ;;  %v71_v1 = vld [vmem:[#allocation5] sm:$0xff]  ;;  %v69_v3 = vld [vmem:[#allocation3] sm:$0xff] }
  0x39   :  { %v72_v2 = vld [vmem:[#allocation5 + $0x8] sm:$0x1f]  ;;  %v92_v5 = vand.u32 4294901760, %v71_v1  ;;  %v70_v6 = vld [vmem:[#allocation3 + $0x8] sm:$0xff]  ;;  %v82_v7 = vsel %vm80_vm1, %v69_v3, 0  ;;  %v595_v32 = vld [vmem:[#allocation7] sm:$0xff] }
  0x3a   :  { %v89_v4 = vsel %vm87_vm0, %v72_v2, 0  ;;  %v85_v9 = vsel %vm80_vm1, %v70_v6, 0  ;;  %v158_v10 = vand.u32 4294901760, %v82_v7  ;;  %v596_v33 = vld [vmem:[#allocation7 + $0x8] sm:$0xff]  ;;  %v614_v34 = vand.u32 4294901760, %v595_v32  ;;  %v597_v38 = vld [vmem:[#allocation7 + $0x10] sm:$0xff] }
  0x3b   :  { %v95_v8 = vand.u32 4294901760, %v89_v4  ;;  %v168_v11 = vand.u32 4294901760, %v85_v9  ;;  %v180_v12 = vsub.f32 %v71_v1, %v92_v5  ;;  %v617_v35 = vand.u32 4294901760, %v596_v33  ;;  %v598_v39 = vld [vmem:[#allocation7 + $0x18] sm:$0xff] }
  0x3c   :  { %v159_v14 = vsub.f32 %v82_v7, %v158_v10  ;;  %v704_v36 = vsub.f32 %v595_v32, %v614_v34  ;;  %v620_v42 = vand.u32 4294901760, %v597_v38  ;;  %v623_v43 = vand.u32 4294901760, %v598_v39  ;;  %v1176_v0 = vld [vmem:[%s1640_s2] ss:$0 sm:$0xff] }
  0x3d   :  { %v1348_v13 = vpack.c.bf16 %v95_v8, %v92_v5  ;;  %v187_v15 = vsub.f32 %v89_v4, %v95_v8  ;;  %v169_v16 = vsub.f32 %v85_v9, %v168_v11  ;;  %v181_v17 = vand.u32 4294901760, %v180_v12 }
  0x3e   :  { %v160_v18 = vand.u32 4294901760, %v159_v14  ;;  %v711_v37 = vsub.f32 %v596_v33, %v617_v35  ;;  %v705_v40 = vand.u32 4294901760, %v704_v36  ;;  %v718_v46 = vsub.f32 %v597_v38, %v620_v42 }
  0x3f   :  { %1349 = vmatprep.subr.bf16.mxu0 %v1348_v13  ;;  %v188_v19 = vand.u32 4294901760, %v187_v15  ;;  %v170_v20 = vand.u32 4294901760, %v169_v16  ;;  %v182_v21 = vsub.f32 %v180_v12, %v181_v17  ;;  %v1356_v30 = vpack.c.bf16 %v187_v15, %v180_v12 }
  0x40   :  { %1351 = vmatpush3.bf16.msra.mxu0 %v1348_v13  ;;  %v161_v22 = vsub.f32 %v159_v14, %v160_v18  ;;  %v712_v41 = vand.u32 4294901760, %v711_v37  ;;  %v706_v44 = vsub.f32 %v704_v36, %v705_v40  ;;  %v725_v47 = vsub.f32 %v598_v39, %v623_v43 }
  0x41   :  { %v189_v23 = vsub.f32 %v187_v15, %v188_v19  ;;  %v171_v24 = vsub.f32 %v169_v16, %v170_v20  ;;  %v183_v25 = vand.u32 4294901760, %v182_v21  ;;  %v1364_v31 = vpack.c.bf16 %v188_v19, %v181_v17  ;;  %v1177_v21 = vld [vmem:[%s1642_s4] ss:$0 sm:$0xff] }
  0x42   :  { %v162_v26 = vand.u32 4294901760, %v161_v22  ;;  %v713_v45 = vsub.f32 %v711_v37, %v712_v41  ;;  %v707_v48 = vand.u32 4294901760, %v706_v44  ;;  %v719_v50 = vand.u32 4294901760, %v718_v46 }
  0x43   :  { %v190_v27 = vand.u32 4294901760, %v189_v23  ;;  %v172_v28 = vand.u32 4294901760, %v171_v24  ;;  %v726_v51 = vand.u32 4294901760, %v725_v47  ;;  %v1372_v58 = vpack.c.bf16 %v617_v35, %v614_v34  ;;  %v1179_v35 = vld [vmem:[#allocation2] ss:$0 sm:$0xff] }
  0x44   :  { %1244 = vmatprep.mubr.f32.mxu0 %v162_v26  ;;  %v714_v49 = vand.u32 4294901760, %v713_v45  ;;  %v720_v53 = vsub.f32 %v718_v46, %v719_v50  ;;  %v1388_v59 = vpack.c.bf16 %v711_v37, %v704_v36  ;;  %v1376_v60 = vpack.c.bf16 %v623_v43, %v620_v42 }
  0x45   :  { %v1352_v29 = vpack.c.bf16 %v190_v27, %v183_v25  ;;  %1245 = vmatmul.mubr.f32.vlgmr.msra.gmra.mrb[0].mxu0 %v172_v28  ;;  %v727_v54 = vsub.f32 %v725_v47, %v726_v51  ;;  %v1392_v61 = vpack.c.bf16 %v725_v47, %v718_v46  ;;  %v1404_v62 = vpack.c.bf16 %v712_v41, %v705_v40  ;;  %v1178_v28 = vld [vmem:[%s1643_s5] ss:$0 sm:$0xff] }
  0x46   :  { %1251 = vmatprep.mubr.f32.mxu0 %v158_v10  ;;  %v1380_v52 = vpack.c.bf16 %v714_v49, %v707_v48  ;;  %v721_v55 = vand.u32 4294901760, %v720_v53  ;;  %v1408_v63 = vpack.c.bf16 %v726_v51, %v719_v50  ;;  %vm606_vm2 = vcmask 261120  }
  0x47   :  { %1353 = vmatprep.subr.bf16.mxu0 %v1352_v29  ;;  %v728_v56 = vand.u32 4294901760, %v727_v54  ;;  %vm1167_vm3 = vcmask 7168  }
  0x48   :  { %1355 = vmatpush3.bf16.msra.mxu0 %v1352_v29  ;;  %1381 = vmatprep.subr.bf16.mxu1 %v1380_v52 }
  0x49   :  { %1357 = vmatprep.subr.bf16.mxu0 %v1356_v30  ;;  %1383 = vmatpush3.bf16.msra.mxu1 %v1380_v52  ;;  %v1384_v57 = vpack.c.bf16 %v728_v56, %v721_v55 }
  0x4b   :  { %1385 = vmatprep.subr.bf16.mxu1 %v1384_v57 }
  0x4d   :  { %1252 = vmatmul.mubr.f32.vlgmr.msra.gmra.mrb[0].mxu0 %v168_v11  ;;  %1387 = vmatpush3.bf16.msra.mxu1 %v1384_v57 }
  0x4e   :  { %1359 = vmatpush3.bf16.msra.mxu0 %v1356_v30  ;;  %1258 = vmatprep.mubr.f32.mxu0 %v159_v14 }
  0x4f   :  { %1361 = vmatprep.subr.bf16.mxu0 %v1348_v13  ;;  %1389 = vmatprep.subr.bf16.mxu1 %v1388_v59 }
  0x55   :  { %1259 = vmatmul.mubr.f32.vlgmr.msra.gmra.mrb[0].mxu0 %v169_v16 }
  0x56   :  { %1363 = vmatpush3.bf16.msra.mxu0 %v1348_v13  ;;  %1265 = vmatprep.mubr.f32.mxu0 %v160_v18 }
  0x57   :  { %1365 = vmatprep.subr.bf16.mxu0 %v1364_v31 }
  0x5d   :  { %1266 = vmatmul.mubr.f32.vlgmr.msra.gmra.mrb[0].mxu0 %v170_v20 }
  0x5e   :  { %1367 = vmatpush3.bf16.msra.mxu0 %v1364_v31  ;;  %1272 = vmatprep.mubr.f32.mxu0 %v158_v10 }
  0x5f   :  { %1369 = vmatprep.subr.bf16.mxu0 %v1348_v13 }
  0x65   :  { %1273 = vmatmul.mubr.f32.vlgmr.msra.gmra.mrb[0].mxu0 %v168_v11 }
  0x66   :  { %1371 = vmatpush3.bf16.msra.mxu0 %v1348_v13  ;;  %1279 = vmatprep.mubr.f32.mxu0 %v158_v10 }
  0x67   :  { %1373 = vmatprep.subr.bf16.mxu0 %v1372_v58 }
  0x6d   :  { %1280 = vmatmul.mubr.f32.vlgmr.msra.gmra.mrb[0].mxu0 %v168_v11 }
  0x6e   :  { %1375 = vmatpush3.bf16.msra.mxu0 %v1372_v58 }
  0x6f   :  { %1377 = vmatprep.subr.bf16.mxu0 %v1376_v60 }
  0x72   :  { %1379 = vmatpush3.bf16.msra.mxu0 %v1376_v60 }
 0x140   :  { %v1281_v1 = vpop.f32.mrb[0].mxu0 }
 0x141   :  { %v1420_v2 = vadd.f32 %v1281_v1, %v1176_v0  ;;  %v583_v3 = vpop.f32.mrb[1].mxu0 }
 0x142   :  { %v1421_v4 = vadd.f32 %v1176_v0, %v583_v3 }
 0x143   :  { %v594_v5 = vmax.f32 %v1420_v2, 0.0 }
 0x144   :  { %v593_v6 = vmax.f32 %v1421_v4, 0.0 }
 0x145   :  { %v611_v7 = vsel %vm606_vm2, %v594_v5, 0 }
 0x146   :  { %v692_v8 = vand.u32 4294901760, %v611_v7  ;;  %v608_v9 = vsel %vm606_vm2, %v593_v6, 0 }
 0x147   :  { %v682_v10 = vand.u32 4294901760, %v608_v9 }
 0x148   :  { %v693_v11 = vsub.f32 %v611_v7, %v692_v8 }
 0x149   :  { %1301 = vmatprep.mubr.f32.mxu1 %v682_v10  ;;  %v683_v12 = vsub.f32 %v608_v9, %v682_v10 }
 0x14a   :  { %v694_v13 = vand.u32 4294901760, %v693_v11  ;;  %1302 = vmatmul.mubr.f32.vlgmr.msra.gmra.mrb[0].mxu1 %v692_v8 }
 0x14b   :  { %1391 = vmatpush3.bf16.msra.mxu1 %v1388_v59  ;;  %1312 = vmatprep.mubr.f32.mxu1 %v683_v12  ;;  %v684_v14 = vand.u32 4294901760, %v683_v12 }
 0x14c   :  { %1393 = vmatprep.subr.bf16.mxu1 %v1392_v61  ;;  %v695_v15 = vsub.f32 %v693_v11, %v694_v13 }
 0x14d   :  { %v685_v16 = vsub.f32 %v683_v12, %v684_v14 }
 0x14e   :  { %v696_v18 = vand.u32 4294901760, %v695_v15 }
 0x14f   :  { %1395 = vmatpush3.bf16.msra.mxu1 %v1392_v61  ;;  %v686_v17 = vand.u32 4294901760, %v685_v16 }
 0x150   :  { %1397 = vmatprep.subr.bf16.mxu1 %v1372_v58 }
 0x151   :  { %1290 = vmatprep.mubr.f32.mxu0 %v686_v17 }
 0x152   :  { %1291 = vmatmul.mubr.f32.vlgmr.msra.gmra.mrb[2].mxu0 %v696_v18  ;;  %1313 = vmatmul.mubr.f32.vlgmr.msra.gmra.mrb[0].mxu1 %v693_v11 }
 0x153   :  { %1399 = vmatpush3.bf16.msra.mxu1 %v1372_v58  ;;  %1323 = vmatprep.mubr.f32.mxu1 %v684_v14 }
 0x154   :  { %1401 = vmatprep.subr.bf16.mxu1 %v1376_v60 }
 0x157   :  { %1403 = vmatpush3.bf16.msra.mxu1 %v1376_v60 }
 0x158   :  { %1405 = vmatprep.subr.bf16.mxu1 %v1404_v62 }
 0x15a   :  { %1324 = vmatmul.mubr.f32.vlgmr.msra.gmra.mrb[0].mxu1 %v694_v13 }
 0x15b   :  { %1407 = vmatpush3.bf16.msra.mxu1 %v1404_v62  ;;  %1334 = vmatprep.mubr.f32.mxu1 %v682_v10 }
 0x15c   :  { %1409 = vmatprep.subr.bf16.mxu1 %v1408_v63 }
 0x15f   :  { %1411 = vmatpush3.bf16.msra.mxu1 %v1408_v63 }
 0x160   :  { %1413 = vmatprep.subr.bf16.mxu1 %v1372_v58 }
 0x162   :  { %1335 = vmatmul.mubr.f32.vlgmr.msra.gmra.mrb[0].mxu1 %v692_v8 }
 0x163   :  { %1415 = vmatpush3.bf16.msra.mxu1 %v1372_v58  ;;  %1345 = vmatprep.mubr.f32.mxu1 %v682_v10 }
 0x164   :  { %1417 = vmatprep.subr.bf16.mxu1 %v1376_v60 }
 0x167   :  { %1419 = vmatpush3.bf16.msra.mxu1 %v1376_v60 }
 0x16a   :  { %1346 = vmatmul.mubr.f32.vlgmr.msra.gmra.mrb[0].mxu1 %v692_v8 }
 0x225   :  { %v1292_v19 = vpop.f32.mrb[2].mxu0 }
 0x226   :  { %v688_v20 = vpop.f32.mrb[3].mxu0  ;;  %v699_v22 = vadd.f32 %v1292_v19, %v1177_v21 }
 0x227   :  { %v689_v23 = vadd.f32 %v1177_v21, %v688_v20 }
 0x23d   :  { %v1347_v24 = vpop.f32.mrb[0].mxu1 }
 0x23e   :  { %v1423_v25 = vadd.f32 %v1347_v24, %v699_v22  ;;  %v1131_v26 = vpop.f32.mrb[1].mxu1 }
 0x23f   :  { %v1425_v27 = vadd.f32 %v1131_v26, %v689_v23 }
 0x240   :  { %v1142_v29 = vmax.f32 %v1423_v25, 0.0 }
 0x241   :  { %v1141_v30 = vmax.f32 %v1425_v27, 0.0 }
 0x242   :  { %v1151_v33 = vmul.f32 %v1178_v28, %v1142_v29 }
 0x243   :  { %v1150_v31 = vmul.f32 %v1178_v28, %v1141_v30 }
 0x244   :  { %v1155_v34 = vsel %vm606_vm2, %v1151_v33, 0.0 }
 0x245   :  { %v1152_v32 = vsel %vm606_vm2, %v1150_v31, 0.0 }
 0x246   :  { %1153 = vadd.xlane.f32.xlu0 %v1152_v32 }
 0x24a   :  { %1156 = vadd.xlane.f32.xlu0 %v1155_v34 }
 0x2d3   :  { %v1154_v36 = vpop.xlane.xlu0 %1153 }
 0x2d4   :  { %v1165_v37 = vadd.f32 %v1179_v35, %v1154_v36 }
 0x2d6   :  { %1168 = vst.msk [vmem:[%s1645_s7] sm:$0xff] %vm1167_vm3, %v1165_v37 }
 0x2d7   :  { %v1157_v38 = vpop.xlane.xlu0 %1156 }
 0x2d8   :  { %v1166_v39 = vadd.f32 %v1179_v35, %v1157_v38 }
 0x2da   :  { %1169 = vst.msk [vmem:[%s1645_s7 + $0x8] sm:$0xff] %vm1167_vm3, %v1166_v39 }
 0x2db   :  { %1174 = vsyncpa [#allocation4], 1 }
 0x2dc   :  { %1175 = vsyncpa [#allocation6], 1 }

</bundles_post_ra>
